<compile_context>
chip_gen: v7x
topology: tpu7x:2x2x1
jax: 0.10.0
libtpu: 0.0.40
codegen_flags: <defaults>
</compile_context>

<pallas_src>
import functools
import math

import jax
import jax.numpy as jnp
from jax.experimental import pallas as pl
from jax.experimental.pallas import tpu as pltpu

_HIGHEST = jax.lax.Precision.HIGHEST


# ----------------------------- kernel bodies --------------------------------


def _softmax_last(s, *, approx):
    # s: f32, softmax over the last (lane) axis.
    m = jnp.max(s, axis=-1, keepdims=True)
    e = jnp.exp(s - m)
    denom = jnp.sum(e, axis=-1, keepdims=True)
    if approx:
        # EUP reciprocal (separate bundle slot) — only on the bf16/MXU path.
        return e * pl.reciprocal(denom, approx=True)
    return e / denom


def _scores_dot(q, k, *, scale, use_mxu):
    """score[b,i,j] = (scale * q[b,i,:]) . k[b,j,:], accumulated in f32."""
    qf = q.astype(jnp.float32)
    if scale != 1.0:
        qf = qf * scale            # fold 1/sqrt(D) into q (Lq*D elems, not Lq*Lk)
    if use_mxu:
        return jnp.einsum(
            "bqd,bkd->bqk", qf.astype(jnp.bfloat16), k.astype(jnp.bfloat16),
            preferred_element_type=jnp.float32)
    # Tiny per-batch contraction: VPU broadcast-multiply + lane reduce, exact f32.
    kf = k.astype(jnp.float32)
    return jnp.sum(qf[:, :, None, :] * kf[:, None, :, :], axis=-1)


def _weighted_values(p, k, *, use_mxu):
    """out[b,i,d] = sum_j p[b,i,j] * k[b,j,d], accumulated in f32."""
    if use_mxu:
        return jnp.einsum(
            "bqk,bkd->bqd", p.astype(jnp.bfloat16), k.astype(jnp.bfloat16),
            preferred_element_type=jnp.float32)
    kf = k.astype(jnp.float32)
    return jnp.sum(p[:, :, :, None] * kf[:, None, :, :], axis=2)


def _store_out(out, o_ref, *, flat_out):
    if flat_out:
        bb, lq, d = out.shape
        out = out.reshape(bb, 1, lq * d)   # lane-dense, unmasked store (D < 128)
    o_ref[...] = out.astype(o_ref.dtype)


def _attn_kernel(q_ref, k_ref, o_ref, *, scale, use_mxu, flat_out):
    # q_ref: (bb, Lq, D), k_ref: (bb, Lk, D)
    q = q_ref[...]
    k = k_ref[...]
    s = _scores_dot(q, k, scale=scale, use_mxu=use_mxu)
    p = _softmax_last(s, approx=use_mxu)
    out = _weighted_values(p, k, use_mxu=use_mxu)
    _store_out(out, o_ref, flat_out=flat_out)


def _mlp_kernel(q_ref, k_ref, w_ref, o_ref, *, embed_dim, use_mxu, flat_out):
    # q_ref: (bb, Lq, D), k_ref: (bb, Lk, D), w_ref: (1, 2D) lane-dense f32 row.
    q = q_ref[...].astype(jnp.float32)
    k = k_ref[...]
    kf = k.astype(jnp.float32)
    w = w_ref[...]
    w_k = w[:, :embed_dim]              # PyTorch concat order is (k, q)
    w_q = w[:, embed_dim:]
    # VPU multiply + lane reduce (exact f32); no N=1 MXU matmuls.
    qw = jnp.sum(q * w_q, axis=-1, keepdims=True)    # (bb, Lq, 1)
    kw = jnp.sum(kf * w_k, axis=-1)                  # (bb, Lk)
    s = jnp.tanh(qw + kw[:, None, :])                # (bb, Lq, Lk)
    p = _softmax_last(s, approx=use_mxu)
    out = _weighted_values(p, k, use_mxu=use_mxu)
    _store_out(out, o_ref, flat_out=flat_out)


# ----------------------------- wrapper helpers -------------------------------


def _xavier_uniform(key, shape):
    # Matches torch.nn.init.xavier_uniform_ for a 2-D tensor.
    fan_out, fan_in = shape
    bound = math.sqrt(6.0 / (fan_in + fan_out))
    return jax.random.uniform(key, shape, jnp.float32, minval=-bound, maxval=bound)


def _vmem_budget_bytes():
    """Generation-aware VMEM budget: ~55% of physical, capped at 48 MiB (v7x-safe)."""
    cap = 64 * 1024 * 1024                     # conservative fallback (v7x physical)
    try:
        info = pltpu.get_tpu_info()
        cap = int(getattr(info, "vmem_capacity_bytes", cap))
    except Exception:
        pass
    return int(min(cap * 0.55, 48 * 1024 * 1024))


def _pick_block_batch(B, Lq, Lk, D, itemsize, scratch_per_batch, budget):
    """Largest divisor of B whose per-step working set fits `budget`,
    keeping >= 2 grid steps whenever B >= 2 (so both v7x TCs get work)."""
    io_per_batch = (2 * Lq * D + Lk * D) * itemsize      # q + out + k tiles
    best = 1
    for bb in range(1, B + 1):
        if B % bb:
            continue
        if B >= 2 and B // bb < 2:
            break                        # never collapse the grid to one step
        vmem = 2 * bb * io_per_batch + bb * scratch_per_batch   # 2x: double buffer
        if vmem > budget:
            break
        best = bb
        if bb * io_per_batch >= 4 * 1024 * 1024:
            break                        # per-step DMA already amortizes overhead
    return best


# --------------------------------- module ------------------------------------


class AttentionPallas:
    def __init__(self, embed_dim, score_function="scaled_dot_product", key=None):
        self.embed_dim = embed_dim
        self.score_function = score_function
        if key is None:
            key = jax.random.PRNGKey(0)
        if score_function == "mlp":
            self.weight = _xavier_uniform(key, (embed_dim * 2, 1))
        elif score_function == "bi_linear":
            self.weight = _xavier_uniform(key, (embed_dim, embed_dim))
        else:
            self.weight = None

    def __call__(self, inputs):
        k, q = inputs
        if q.ndim == 2:
            q = q[:, None, :]
        if k.ndim == 2:
            k = k[:, None, :]
        B, Lq, D = q.shape
        _, Lk, _ = k.shape
        assert D == self.embed_dim
        out_dtype = q.dtype

        if self.score_function == "bi_linear":
            # Hoist the batch-invariant (D, D) projection out of the grid loop:
            # one large XLA matmul with f32 accumulation, then plain attention.
            q = jnp.einsum("bqd,de->bqe", q.astype(jnp.float32), self.weight,
                           precision=_HIGHEST, preferred_element_type=jnp.float32)

        itemsize = max(jnp.dtype(q.dtype).itemsize, jnp.dtype(k.dtype).itemsize)

        # MXU only pays off for reasonably large per-batch contractions; the
        # module's typical shapes (Lq=Lk=8, D=32) stay on the VPU/XLU in f32
        # (the kernel is DMA/overhead-bound there and this keeps it exact).
        use_mxu = (Lq * Lk * D) >= (64 * 64 * 64)

        scratch_per_batch = (3 * Lq * Lk + Lq * D) * 4       # scores + softmax + acc
        if not use_mxu:
            scratch_per_batch += 2 * Lq * Lk * D * 4         # VPU broadcast products
        budget = _vmem_budget_bytes()
        bb = _pick_block_batch(B, Lq, Lk, D, itemsize, scratch_per_batch, budget)
        grid = (B // bb,)

        # Lane-dense output layout: with D < 128 a (.., D) store is a masked vst;
        # writing a (bb, 1, Lq*D) slab gives unmasked, contiguous stores.
        flat_out = (D % 128 != 0) and ((Lq * D) % 128 == 0)

        q_spec = pl.BlockSpec((bb, Lq, D), lambda b: (b, 0, 0))
        k_spec = pl.BlockSpec((bb, Lk, D), lambda b: (b, 0, 0))
        if flat_out:
            out_struct = jax.ShapeDtypeStruct((B, 1, Lq * D), out_dtype)
            o_spec = pl.BlockSpec((bb, 1, Lq * D), lambda b: (b, 0, 0))
        else:
            out_struct = jax.ShapeDtypeStruct((B, Lq, D), out_dtype)
            o_spec = pl.BlockSpec((bb, Lq, D), lambda b: (b, 0, 0))

        cparams = pltpu.CompilerParams(
            dimension_semantics=("parallel",),
            vmem_limit_bytes=budget,
        )

        matmul_flops = 4 * B * Lq * Lk * D                 # scores + p@k
        io_bytes = (2 * B * Lq * D + B * Lk * D) * itemsize

        if self.score_function in ("scaled_dot_product", "bi_linear"):
            scale = (1.0 / math.sqrt(self.embed_dim)
                     if self.score_function == "scaled_dot_product" else 1.0)
            kernel = functools.partial(_attn_kernel, scale=scale,
                                       use_mxu=use_mxu, flat_out=flat_out)
            cost = pl.CostEstimate(flops=matmul_flops,
                                   transcendentals=2 * B * Lq * Lk,
                                   bytes_accessed=io_bytes)
            out = pl.pallas_call(
                kernel, out_shape=out_struct, grid=grid,
                in_specs=[q_spec, k_spec], out_specs=o_spec,
                compiler_params=cparams, cost_estimate=cost,
            )(q, k)
        elif self.score_function == "mlp":
            w_row = self.weight.reshape(1, 2 * D)          # lane-dense weight row
            w_spec = pl.BlockSpec((1, 2 * D), lambda b: (0, 0))
            kernel = functools.partial(_mlp_kernel, embed_dim=self.embed_dim,
                                       use_mxu=use_mxu, flat_out=flat_out)
            cost = pl.CostEstimate(
                flops=2 * B * Lq * Lk * D + 2 * B * (Lq + Lk) * D,
                transcendentals=3 * B * Lq * Lk,
                bytes_accessed=io_bytes + 2 * D * 4)
            out = pl.pallas_call(
                kernel, out_shape=out_struct, grid=grid,
                in_specs=[q_spec, k_spec, w_spec], out_specs=o_spec,
                compiler_params=cparams, cost_estimate=cost,
            )(q, k, w_row)
        else:
            raise RuntimeError("invalid score_function")

        if flat_out:
            out = out.reshape(B, Lq, D)
        return out


# ------------------------- pure-JAX reference ---------------------------------


def _reference(k, q, embed_dim, score_function, weight):
    if q.ndim == 2:
        q = q[:, None, :]
    if k.ndim == 2:
        k = k[:, None, :]
    if score_function == "scaled_dot_product":
        score = jnp.einsum("bqd,bkd->bqk", q, k,
                           precision=_HIGHEST) / math.sqrt(embed_dim)
    elif score_function == "bi_linear":
        score = jnp.einsum("bqd,de,bke->bqk", q, weight, k, precision=_HIGHEST)
    elif score_function == "mlp":
        kw = jnp.einsum("bkd,d->bk", k, weight[:embed_dim, 0], precision=_HIGHEST)
        qw = jnp.einsum("bqd,d->bq", q, weight[embed_dim:, 0], precision=_HIGHEST)
        score = jnp.tanh(qw[:, :, None] + kw[:, None, :])
    else:
        raise RuntimeError("invalid score_function")
    p = jax.nn.softmax(score, axis=-1)
    return jnp.einsum("bqk,bkd->bqd", p, k, precision=_HIGHEST)


# ------------------------------- main ------------------------------------------

if __name__ == "__main__":
    B, Lq, Lk, D = 2, 8, 8, 32   # embed_dim = 32
    root = jax.random.PRNGKey(0)
    kq_key, kk_key, w_key = jax.random.split(root, 3)
    q = jax.random.normal(kq_key, (B, Lq, D), jnp.float32)
    k = jax.random.normal(kk_key, (B, Lk, D), jnp.float32)

    for score_fn in ("scaled_dot_product", "bi_linear", "mlp"):
        attn = AttentionPallas(D, score_function=score_fn, key=w_key)
        out = jax.block_until_ready(attn((k, q)))
        ref = _reference(k, q, D, score_fn, attn.weight)
        assert out.shape == (B, Lq, D), (score_fn, out.shape)
        err = float(jnp.max(jnp.abs(out - ref)))
        assert err < 5e-4, (score_fn, err)

    print("KERNEL_OK")
</pallas_src>

<mosaic_0001>
module attributes {stable_mosaic.version = 11 : i64} {
  func.func @_attn_kernel(%arg0: i32, %arg1: memref<1x8x32xf32, #tpu.memory_space<vmem>>, %arg2: memref<1x8x32xf32, #tpu.memory_space<vmem>>, %arg3: memref<1x1x256xf32, #tpu.memory_space<vmem>>) attributes {dimension_semantics = [#tpu.dimension_semantics<parallel>], iteration_bounds = array<i64: 2>, scalar_prefetch = 0 : i64, scratch_operands = 0 : i64, tpu.core_type = #tpu.core_type<tc>, window_params = [{transform_indices = @transform_0, window_bounds = array<i64: 1, 8, 32>}, {transform_indices = @transform_1, window_bounds = array<i64: 1, 8, 32>}, {transform_indices = @transform_2, window_bounds = array<i64: 1, 1, 256>}]} {
    %c0 = arith.constant 0 : index
    %c0_0 = arith.constant 0 : index
    %c0_1 = arith.constant 0 : index
    %0 = vector.load %arg1[%c0, %c0_0, %c0_1] : memref<1x8x32xf32, #tpu.memory_space<vmem>>, vector<1x8x32xf32>
    %c0_2 = arith.constant 0 : index
    %c0_3 = arith.constant 0 : index
    %c0_4 = arith.constant 0 : index
    %1 = vector.load %arg2[%c0_2, %c0_3, %c0_4] : memref<1x8x32xf32, #tpu.memory_space<vmem>>, vector<1x8x32xf32>
    %cst = arith.constant 0.176776692 : f32
    %2 = vector.broadcast %cst : f32 to vector<1x8x32xf32>
    %3 = arith.mulf %0, %2 : vector<1x8x32xf32>
    %4 = vector.shape_cast %3 : vector<1x8x32xf32> to vector<1x8x1x32xf32>
    %5 = vector.shape_cast %1 : vector<1x8x32xf32> to vector<1x1x8x32xf32>
    %6 = vector.broadcast %4 : vector<1x8x1x32xf32> to vector<1x8x8x32xf32>
    %7 = vector.broadcast %5 : vector<1x1x8x32xf32> to vector<1x8x8x32xf32>
    %8 = arith.mulf %6, %7 : vector<1x8x8x32xf32>
    %cst_5 = arith.constant dense<0.000000e+00> : vector<1x8x8xf32>
    %9 = vector.multi_reduction <add>, %8, %cst_5 [3] : vector<1x8x8x32xf32> to vector<1x8x8xf32>
    %cst_6 = arith.constant dense<0xFF800000> : vector<1x8xf32>
    %10 = vector.multi_reduction <maximumf>, %9, %cst_6 [2] : vector<1x8x8xf32> to vector<1x8xf32>
    %11 = vector.shape_cast %10 : vector<1x8xf32> to vector<1x8x1xf32>
    %12 = vector.broadcast %11 : vector<1x8x1xf32> to vector<1x8x8xf32>
    %13 = arith.subf %9, %12 : vector<1x8x8xf32>
    %14 = math.exp %13 : vector<1x8x8xf32>
    %cst_7 = arith.constant dense<0.000000e+00> : vector<1x8xf32>
    %15 = vector.multi_reduction <add>, %14, %cst_7 [2] : vector<1x8x8xf32> to vector<1x8xf32>
    %16 = vector.shape_cast %15 : vector<1x8xf32> to vector<1x8x1xf32>
    %17 = vector.broadcast %16 : vector<1x8x1xf32> to vector<1x8x8xf32>
    %18 = arith.divf %14, %17 : vector<1x8x8xf32>
    %19 = vector.shape_cast %18 : vector<1x8x8xf32> to vector<1x8x8x1xf32>
    %20 = vector.shape_cast %1 : vector<1x8x32xf32> to vector<1x1x8x32xf32>
    %21 = vector.broadcast %19 : vector<1x8x8x1xf32> to vector<1x8x8x32xf32>
    %22 = vector.broadcast %20 : vector<1x1x8x32xf32> to vector<1x8x8x32xf32>
    %23 = arith.mulf %21, %22 : vector<1x8x8x32xf32>
    %cst_8 = arith.constant dense<0.000000e+00> : vector<1x8x32xf32>
    %24 = vector.multi_reduction <add>, %23, %cst_8 [2] : vector<1x8x8x32xf32> to vector<1x8x32xf32>
    %25 = vector.shape_cast %24 : vector<1x8x32xf32> to vector<1x1x256xf32>
    %c0_9 = arith.constant 0 : index
    %c0_10 = arith.constant 0 : index
    %c0_11 = arith.constant 0 : index
    %26 = vector.load %arg3[%c0_9, %c0_10, %c0_11] : memref<1x1x256xf32, #tpu.memory_space<vmem>>, vector<1x1x256xf32>
    tpu.vector_store %arg3[%c0_9, %c0_10, %c0_11], %25 {strides = array<i32>} : memref<1x1x256xf32, #tpu.memory_space<vmem>>, vector<1x1x256xf32>,
    return
  }
  func.func @transform_0(%arg0: i32) -> (i32, i32, i32) {
    %c0_i32 = arith.constant 0 : i32
    %c0_i32_0 = arith.constant 0 : i32
    %c0_i32_1 = arith.constant 0 : i32
    return %arg0, %c0_i32, %c0_i32_0 : i32, i32, i32
  }
  func.func @transform_1(%arg0: i32) -> (i32, i32, i32) {
    %c0_i32 = arith.constant 0 : i32
    %c0_i32_0 = arith.constant 0 : i32
    %c0_i32_1 = arith.constant 0 : i32
    return %arg0, %c0_i32, %c0_i32_0 : i32, i32, i32
  }
  func.func @transform_2(%arg0: i32) -> (i32, i32, i32) {
    %c0_i32 = arith.constant 0 : i32
    %c0_i32_0 = arith.constant 0 : i32
    %c0_i32_1 = arith.constant 0 : i32
    return %arg0, %c0_i32, %c0_i32_0 : i32, i32, i32
  }
}

</mosaic_0001>

<bundles_post_ra>
// kernel: tpu_custom_call.1
= control target key start
LH: loop header
LB: loop body
LE: loop exit
PB: predicated region body
PF: predicated region fallthrough
CT: control target
= control target key end

     0   :  { %7 = vsyncpa [#allocation3], 0  ;;  %s1562_s0 = inlined_call_operand.hbm [shape: f32[2,8,32], index: 0, kind: input, shape index: {}]   ;;  %s1563_s1 = inlined_call_operand.hbm [shape: f32[2,8,32], index: 1, kind: input, shape index: {}]   ;;  %s1564_s2 = inlined_call_operand.hbm [shape: f32[2,1,256], index: 2, kind: output, shape index: {}]  }
   0x1   :  { %9 = vsyncpa [#allocation3 + $0x1], 0 }
   0x2   :  { %10 = vsyncpa [#allocation6], 0 }
   0x3   :  { %12 = vsyncpa [#allocation6 + $0x1], 0 }
   0x4   :  { %13 = vsyncpa [#allocation4], 0 }
   0x5   :  { %15 = vsyncpa [#allocation4 + $0x1], 0  ;;  %s1180_s9 = smov 0   ;;  %s1182_s10 = smov 0  }
   0x6   :  { %s1184_s11 = smov 0   ;;  %s1186_s12 = smov 0  }
   0x7 LB: > { %s1201_s13 = sadd.s32 4294967295, %s1152_s12   ;;  %s912_s14 = sadd.s32 4294967294, %s1152_s12   ;;  %s1152_s12 = sphi %s1186_s12, %s1583_s12   ;;  %s1148_s11 = sphi %s1184_s11, %s1582_s11   ;;  %s1144_s10 = sphi %s1182_s10, %s1581_s10   ;;  %s1140_s9 = sphi %s1180_s9, %s1580_s9  }
   0x8   : > { %s1205_s15 = sadd.s32 1, %s1152_s12   ;;  %s28_s16 = sadd.s32 1, %s1148_s11 }
   0x9   : > { %s25_s17 = ssub.s32 %s1152_s12, %s1205_s15  ;;  %p35_p0 = scmp.ne.s32.totalorder %s1148_s11, %s1144_s10 }
   0xa   : > { %p26_p1 = scmp.eq.s32.totalorder %s25_s17, 0  ;;  %p36_p2 = scmp.eq.s32.totalorder %s1152_s12, 0 }
   0xb   : > { %p41_p3 = scmp.ne.s32.totalorder %s1144_s10, %s1140_s9  ;;  %p42_p4 = scmp.eq.s32.totalorder %s1201_s13, 0 }
   0xc   : > { %s1217_s18 = scalar_select %p26_p1, %s1148_s11, %s28_s16  }
   0xd   : > { %p1219_p5 = por %p36_p2, %p35_p0  ;;  %p1223_p6 = por %p42_p4, %p41_p3 }
   0xe   : > { %p91_p7 = scmp.eq.s32.totalorder %s1201_s13, 1  ;;  %p97_p8 = scmp.eq.s32.totalorder %s912_s14, 1 }
   0xf   : > { %s1568_s20 = scalar_select %p1223_p6, 1, 0 }
  0x10   : > { %p946_p10 = scmp.lt.s32.totalorder %s1152_s12, 2  ;;  %p1230_p11 = por %p91_p7, %p35_p0 }
  0x11   : > { %p1234_p12 = por %p97_p8, %p41_p3  ;;  %s1239_s23 = sand.u32 1, %s1148_s11  }
  0x12   : > { %s1569_s21 = scalar_select %p1230_p11, 1, 0 }
  0x13   : > { %s1570_s22 = scalar_select %p1234_p12, 1, 0 }
  0x14   : > { %s916_s24 = sshll.u32 %s1152_s12, 7  ;;  %s915_s25 = sshll.u32 %s1239_s23, 3 }
  0x15   : > { %s1248_s28 = scalar_lea.hbm %s1562_s0, %s916_s24  ;;  %s121_s29 = scalar_lea.vmem [#allocation2], %s915_s25 }
  0x16   : > { %s128_s30 = sshll.u32 %s121_s29, 4  ;;  %p1254_p13 = pnand %p946_p10, %p1219_p5  ;;  %s1258_s30 = int_to_ptr.vmem [resolvable:$true] %s128_s30 }
  0x17   : > { %s118_s4 = scalar_lea.sflag [#allocation3], %s1239_s23  ;;  %s1022_s5 = scalar_lea.hbm %s1248_s28, 128 }
  0x18   : > { %p1023_p2 = scmp.ne.s32.totalorder %s1248_s28, %s1022_s5  ;;  %p1024_p3 = pneg %p1254_p13 }
  0x19   : > { %s1027_s8 = scalar_lea.hbm %s1562_s0, 256  ;;  %p1028_p5 = scmp.lt.u32.totalorder %s1248_s28, %s1562_s0 }
  0x1a   : > { %p1025_p4 = pnand %p1024_p3, %p1023_p2  ;;  %p1029_p8 = scmp.lt.u32.totalorder %s1027_s8, %s1022_s5 }
  0x1b   : > { %p1031_p9 = scmp.lt.u32.totalorder %s1022_s5, %s1248_s28 }
  0x1c   : > { %p1026_p7 = pneg %p1025_p4  ;;  %p1030_p10 = por %p1029_p8, %p1028_p5 }
  0x1e   : > { %p1032_p0 = por %p1031_p9, %p1030_p10 }
  0x20   : > { %p1033_p1 = pnand %p1032_p0, %p1026_p7 }
  0x22   : > { %1036 = shalt.err (!%p1033_p1)
}
  0x23   : > { %s1037_s17 = scalar_lea.vmem %s1258_s30, 128  ;;  %s1154_s19 = smov [#allocation2]  }
  0x24   : > { %p1038_p2 = scmp.ne.s32.totalorder %s1258_s30, %s1037_s17  ;;  %s1042_s26 = sshll.u32 %s1154_s19, 4  ;;  %s1043_s26 = int_to_ptr.vmem [resolvable:$false] %s1042_s26 }
  0x25   : > { %s1044_s27 = scalar_lea.vmem %s1043_s26, 256  ;;  %p1045_p11 = scmp.lt.s32.totalorder %s1258_s30, %s1043_s26 }
  0x26   : > { %p1040_p4 = pnand %p1038_p2, %p1024_p3  ;;  %p1046_p5 = scmp.lt.s32.totalorder %s1044_s27, %s1037_s17 }
  0x28   : > { %p1041_p12 = pneg %p1040_p4  ;;  %p1047_p8 = por %p1046_p5, %p1045_p11 }
  0x2a   : > { %p1048_p9 = pnand %p1047_p8, %p1041_p12 }
  0x2c   : > { %1051 = shalt.err (!%p1048_p9)
}
  0x2d   : > { %938 = dma.hbm_to_vmem [thread:$0]  (!%p1254_p13), %s1248_s28, 128, %s1258_s30, %s118_s4  }
  0x2e   : > { %p1572_p0 = scmp.lt.s32.totalorder %s1152_s12, 3  ;;  %p1573_p1 = scmp.ge.s32.totalorder %s1152_s12, 1 }
  0x2f   : > { %s1301_s7 = scalar_lea.hbm %s1563_s1, %s916_s24  ;;  %s139_s8 = scalar_lea.vmem [#allocation5], %s915_s25 }
  0x30   : > { %p1292_p7 = pnand %p1573_p1, %p1572_p0  ;;  %s146_s14 = sshll.u32 %s139_s8, 4  ;;  %s147_s14 = int_to_ptr.vmem [resolvable:$true] %s146_s14 }
  0x31   : > { %s136_s28 = scalar_lea.sflag [#allocation6], %s1239_s23  ;;  %s1052_s30 = scalar_lea.hbm %s1301_s7, 128 }
  0x32   : > { %s1574_s29 = scalar_select %p1292_p7, 1, 0 }
  0x33   : > { %p1053_p11 = scmp.ne.s32.totalorder %s1301_s7, %s1052_s30  ;;  %s1057_s24 = scalar_lea.hbm %s1563_s1, 256 }
  0x34   : > { %p1058_p2 = scmp.lt.u32.totalorder %s1301_s7, %s1563_s1  ;;  %p1059_p4 = scmp.lt.u32.totalorder %s1057_s24, %s1052_s30 }
  0x35   : > { %p1055_p12 = pnand %p1053_p11, %p1024_p3  ;;  %p1061_p8 = scmp.lt.u32.totalorder %s1052_s30, %s1301_s7 }
  0x36   : > { %p1060_p5 = por %p1059_p4, %p1058_p2 }
  0x37   : > { %p1056_p10 = pneg %p1055_p12 }
  0x38   : > { %p1062_p9 = por %p1061_p8, %p1060_p5 }
  0x3a   : > { %p1063_p0 = pnand %p1062_p9, %p1056_p10 }
  0x3c   : > { %1066 = shalt.err (!%p1063_p0)
}
  0x3d   : > { %s1067_s23 = scalar_lea.vmem %s147_s14, 128  ;;  %s1155_s25 = smov [#allocation5]  }
  0x3e   : > { %p1068_p1 = scmp.ne.s32.totalorder %s147_s14, %s1067_s23  ;;  %s1072_s26 = sshll.u32 %s1155_s25, 4  ;;  %s1073_s26 = int_to_ptr.vmem [resolvable:$false] %s1072_s26 }
  0x3f   : > { %s1074_s27 = scalar_lea.vmem %s1073_s26, 256  ;;  %p1075_p6 = scmp.lt.s32.totalorder %s147_s14, %s1073_s26 }
  0x40   : > { %p1070_p11 = pnand %p1068_p1, %p1024_p3  ;;  %p1076_p7 = scmp.lt.s32.totalorder %s1074_s27, %s1067_s23 }
  0x42   : > { %p1071_p12 = pneg %p1070_p11  ;;  %p1077_p2 = por %p1076_p7, %p1075_p6 }
  0x44   : > { %p1078_p4 = pnand %p1077_p2, %p1071_p12 }
  0x46   : > { %1081 = shalt.err (!%p1078_p4)
}
  0x47   : > { %941 = dma.hbm_to_vmem [thread:$0]  (!%p1254_p13), %s1301_s7, 128, %s147_s14, %s136_s28  }
  0x48   : > { %p1575_p10 = scmp.ne.s32.totalorder %s1574_s29, 0 }
  0x49   : > { %s1328_s5 = sand.u32 (!%p1575_p10), 1, %s1144_s10   ;;  %p1576_p3 = scmp.ne.s32.totalorder (!%p1575_p10), %s1568_s20, 0 }
  0x4a   : > { %155 = sbr.rel (%p1575_p10) target bundleno = 1058 (0x422), region = 28  ;;  %s920_s6 = sshll.u32 (!%p1575_p10), %s1328_s5, 3 }
  0x4b   : > { %s158_s8 = scalar_lea.sflag (!%p1575_p10), [#allocation3], %s1328_s5  ;;  %s161_s30 = scalar_lea.vmem (!%p1575_p10), [#allocation2], %s920_s6 }
  0x51   : > { %1127 = dma.done.wait (%p1576_p3), %s158_s8, 128  }
  0x52   : > { %1129 = vsyncadd (%p1576_p3), %s158_s8, 4294967168  ;;  %s167_s3 = scalar_lea.sflag [#allocation6], %s1328_s5  ;;  %s170_s7 = scalar_lea.vmem [#allocation5], %s920_s6 }
  0x53   : > { %1131 = dma.done.wait (%p1576_p3), %s167_s3, 128  }
  0x54   : > { %1133 = vsyncadd (%p1576_p3), %s167_s3, 4294967168  ;;  %v204_v0 = vlaneseq  ;;  %v1156_v1 = vmov 1966171168   ;;  %v196_v6 = vld [vmem:[%s161_s30] sm:$0xff]  ;;  %v1353_v14 = vld [vmem:[%s170_s7] sm:$0xff]  ;;  %vm297_vm0 = vcmask 261120  }
  0x55   : > { %v202_v2 = vunpack.c.l.s4 %v1156_v1  ;;  %v198_v7 = vmul.f32 0.17677669, %v196_v6  ;;  %vm364_vm1 = vcmask 1041409   ;;  %vm366_vm2 = vcmask 1042434   ;;  %s1161_s20 = smov 32   ;;  %s1162_s29 = smov 64  }
  0x56   : > { %v1342_v3 = vshrl.u32 %v204_v0, 7  ;;  %v331_v47 = vand.u32 127, %v204_v0  ;;  %vm368_vm3 = vcmask 1043459   ;;  %vm370_vm4 = vcmask 1044484   ;;  %s1163_s14 = smov 96   ;;  %s922_s28 = sshll.u32 %s1328_s5, 1 }
  0x57   : > { %v203_v4 = vunpack.c.0.s8 %v202_v2  ;;  %v200_v10 = vcombine.high %v198_v7, %v198_v7  ;;  %vm372_vm5 = vcmask 1045509   ;;  %vm374_vm6 = vcmask 1046534   ;;  %s928_s4 = sshll.u32 %s1201_s13, 5  ;;  %s195_s16 = scalar_lea.vmem [#allocation7], %s922_s28 }
  0x58   : > { %v1349_v9 = vsub.s32 0, %v1342_v3  ;;  %v1384_v49 = vsub.s32 %v331_v47, %v1342_v3  ;;  %vm376_vm7 = vcmask 1047559   ;;  %vm379_vm8 = vcmask 64512   ;;  %s819_s24 = sshll.u32 %s195_s16, 4  ;;  %s1518_s23 = scalar_lea.hbm %s1564_s2, %s928_s4  ;;  %s1520_s24 = int_to_ptr.vmem [resolvable:$true] %s819_s24 }
  0x59   : > { %v1345_v5 = vsub.s32 %v203_v4, %v1342_v3  ;;  %vm774_vm9 = vcmask 523264   ;;  %vm776_vm10 = vcmask 785408   ;;  %vm801_vm11 = vcmp.lt.s32.totalorder %v204_v0, 256  ;;  %s805_s13 = scalar_lea.sflag [#allocation4], %s1328_s5  ;;  %s1082_s25 = scalar_lea.vmem %s1520_s24, 32 }
  0x5a   : > { %p1083_p6 = scmp.ne.s32.totalorder %s1520_s24, %s1082_s25  ;;  %p1577_p13 = scmp.ne.s32.totalorder %s1569_s21, 0 }
  0x5b   : > { %v207_v8 = vrot.slane %v198_v7, %v1345_v5  ;;  %v214_v13 = vrot.slane %v200_v10, %v1345_v5  ;;  %s1164_s26 = smov [#allocation7]  }
  0x5c   : > { %p1084_p7 = pnand %p1083_p6, %p1577_p13  ;;  %s1086_s27 = sshll.u32 %s1164_s26, 4  ;;  %s1087_s27 = int_to_ptr.vmem [resolvable:$false] %s1086_s27 }
  0x5d   : > { %v223_v11 = vrot.slane %v207_v8, %v1345_v5  ;;  %v215_v12 = vcombine.high %v207_v8, %v207_v8  ;;  %v230_v18 = vrot.slane %v214_v13, %v1345_v5  ;;  %v216_v19 = vcombine.high %v214_v13, %v214_v13  ;;  %s1088_s6 = scalar_lea.vmem %s1087_s27, 64  ;;  %p1089_p8 = scmp.lt.s32.totalorder %s1520_s24, %s1087_s27 }
  0x5e   : > { %v1157_v13 = vmov 0   ;;  %p1085_p5 = pneg %p1084_p7  ;;  %p1090_p9 = scmp.lt.s32.totalorder %s1088_s6, %s1082_s25 }
  0x5f   : > { %v252_v15 = vrot.slane %v223_v11, %v1349_v9  ;;  %v245_v16 = vcombine.high %v223_v11, %v223_v11  ;;  %v237_v17 = vrot.slane %v215_v12, %v1345_v5  ;;  %v268_v24 = vrot.slane %v230_v18, %v1349_v9  ;;  %989 = vset.pattern.permute.xlu0 %v1157_v13 }
  0x60   : > { %v244_v25 = vrot.slane %v216_v19, %v1345_v5  ;;  %v246_v26 = vcombine.high %v230_v18, %v230_v18  ;;  %988 = vset.pattern.permute.xlu1 %v1157_v13  ;;  %p1091_p0 = por %p1090_p9, %p1089_p8 }
  0x61   : > { %v289_v20 = vmul.f32 %v252_v15, %v1353_v14  ;;  %v260_v21 = vrot.slane %v245_v16, %v1349_v9  ;;  %v256_v22 = vrot.slane %v237_v17, %v1349_v9  ;;  %v247_v23 = vcombine.high %v237_v17, %v237_v17 }
  0x62   : > { %v293_v31 = vmul.f32 %v268_v24, %v1353_v14  ;;  %v272_v32 = vrot.slane %v244_v25, %v1349_v9  ;;  %v248_v33 = vcombine.high %v244_v25, %v244_v25  ;;  %v276_v37 = vrot.slane %v246_v26, %v1349_v9  ;;  %p1092_p1 = pnand %p1091_p0, %p1085_p5 }
  0x63   : > { %v298_v27 = vsel %vm297_vm0, %v289_v20, 0.0  ;;  %v291_v28 = vmul.f32 %v260_v21, %v1353_v14  ;;  %v290_v29 = vmul.f32 %v256_v22, %v1353_v14  ;;  %v264_v30 = vrot.slane %v247_v23, %v1349_v9 }
  0x64   : > { %299 = vadd.xlane.f32.xlu0 %v298_v27  ;;  %v294_v39 = vmul.f32 %v272_v32, %v1353_v14  ;;  %v280_v40 = vrot.slane %v248_v33, %v1349_v9  ;;  %v310_v41 = vsel %vm297_vm0, %v293_v31, 0.0  ;;  %v295_v42 = vmul.f32 %v276_v37, %v1353_v14 }
  0x65   : > { %v304_v34 = vsel %vm297_vm0, %v291_v28, 0.0  ;;  %v301_v35 = vsel %vm297_vm0, %v290_v29, 0.0  ;;  %v292_v36 = vmul.f32 %v264_v30, %v1353_v14  ;;  %v390_v15 = vsub.s32 1, %v1342_v3 }
  0x66   : > { %305 = vadd.xlane.f32.xlu1 %v304_v34  ;;  %v313_v43 = vsel %vm297_vm0, %v294_v39, 0.0  ;;  %v296_v44 = vmul.f32 %v280_v40, %v1353_v14  ;;  %v316_v45 = vsel %vm297_vm0, %v295_v42, 0.0  ;;  %v394_v16 = vsub.s32 2, %v1342_v3 }
  0x67   : > { %v307_v38 = vsel %vm297_vm0, %v292_v36, 0.0  ;;  %v398_v17 = vsub.s32 3, %v1342_v3  ;;  %v402_v22 = vsub.s32 4, %v1342_v3  ;;  %v406_v29 = vsub.s32 5, %v1342_v3 }
  0x68   : > { %302 = vadd.xlane.f32.xlu0 %v301_v35  ;;  %v319_v46 = vsel %vm297_vm0, %v296_v44, 0.0  ;;  %v410_v33 = vsub.s32 6, %v1342_v3  ;;  %v414_v37 = vsub.s32 7, %v1342_v3 }
  0x6a   : > { %308 = vadd.xlane.f32.xlu1 %v307_v38 }
  0x6c   : > { %311 = vadd.xlane.f32.xlu0 %v310_v41 }
  0x6e   : > { %314 = vadd.xlane.f32.xlu1 %v313_v43 }
  0x70   : > { %317 = vadd.xlane.f32.xlu0 %v316_v45 }
  0x72   : > { %320 = vadd.xlane.f32.xlu1 %v319_v46 }
  0xf1   : > { %v300_v48 = vpop.xlane.xlu0 %299 }
  0xf2   : > { %v335_v52 = vrot.slane %v300_v48, %v1384_v49 }
  0xf3   : > { %v306_v50 = vpop.xlane.xlu1 %305 }
  0xf4   : > { %v343_v54 = vrot.slane %v306_v50, %v1384_v49 }
  0xf5   : > { %v303_v51 = vpop.xlane.xlu0 %302 }
  0xf6   : > { %v339_v53 = vrot.slane %v303_v51, %v1384_v49 }
  0xf7   : > { %v309_v55 = vpop.xlane.xlu1 %308 }
  0xf8   : > { %v365_v56 = vsel %vm364_vm1, %v339_v53, %v335_v52  ;;  %v347_v57 = vrot.slane %v309_v55, %v1384_v49 }
  0xf9   : > { %v367_v58 = vsel %vm366_vm2, %v343_v54, %v365_v56  ;;  %v312_v59 = vpop.xlane.xlu0 %311 }
  0xfa   : > { %v369_v60 = vsel %vm368_vm3, %v347_v57, %v367_v58  ;;  %v351_v61 = vrot.slane %v312_v59, %v1384_v49 }
  0xfb   : > { %v315_v62 = vpop.xlane.xlu1 %314 }
  0xfc   : > { %v371_v63 = vsel %vm370_vm4, %v351_v61, %v369_v60  ;;  %v355_v1 = vrot.slane %v315_v62, %v1384_v49 }
  0xfd   : > { %v318_v2 = vpop.xlane.xlu0 %317 }
  0xfe   : > { %v359_v4 = vrot.slane %v318_v2, %v1384_v49  ;;  %v373_v6 = vsel %vm372_vm5, %v355_v1, %v371_v63 }
  0xff   : > { %v321_v7 = vpop.xlane.xlu1 %320 }
 0x100   : > { %v363_v8 = vrot.slane %v321_v7, %v1384_v49  ;;  %v375_v10 = vsel %vm374_vm6, %v359_v4, %v373_v6 }
 0x102   : > { %v377_v11 = vsel %vm376_vm7, %v363_v8, %v375_v10 }
 0x103   : > { %v380_v12 = vsel %vm379_vm8, %v377_v11, -inf }
 0x104   : > { %381 = vmax.xlane.f32.xlu0 %v380_v12 }
 0x191   : > { %v382_v18 = vpop.xlane.xlu0 %381 }
 0x192   : > { %v387_v19 = vrot.slane %v382_v18, %v1349_v9  ;;  %v391_v20 = vrot.slane %v382_v18, %v390_v15  ;;  %v395_v21 = vrot.slane %v382_v18, %v394_v16  ;;  %v399_v23 = vrot.slane %v382_v18, %v398_v17 }
 0x193   : > { %v403_v30 = vrot.slane %v382_v18, %v402_v22  ;;  %v407_v34 = vrot.slane %v382_v18, %v406_v29  ;;  %v411_v38 = vrot.slane %v382_v18, %v410_v33  ;;  %v415_v43 = vrot.slane %v382_v18, %v414_v37 }
 0x194   : > { %v424_v24 = vsub.f32 %v300_v48, %v387_v19  ;;  %v425_v25 = vsub.f32 %v303_v51, %v391_v20  ;;  %v426_v26 = vsub.f32 %v306_v50, %v395_v21  ;;  %v427_v31 = vsub.f32 %v309_v55, %v399_v23 }
 0x195   : > { %v428_v35 = vsub.f32 %v312_v59, %v403_v30  ;;  %v429_v39 = vsub.f32 %v315_v62, %v407_v34  ;;  %v430_v44 = vsub.f32 %v318_v2, %v411_v38  ;;  %v431_v47 = vsub.f32 %v321_v7, %v415_v43 }
 0x196   : > { %v432_v27 = vmul.f32 1.442695, %v424_v24  ;;  %v434_v28 = vmul.f32 1.442695, %v425_v25  ;;  %v436_v32 = vmul.f32 1.442695, %v426_v26 }
 0x197   : > { %v438_v36 = vmul.f32 1.442695, %v427_v31  ;;  %v440_v40 = vmul.f32 1.442695, %v428_v35  ;;  %v442_v45 = vmul.f32 1.442695, %v429_v39 }
 0x198   : > { %990 = vpow2.f32 %v432_v27  ;;  %v444_v48 = vmul.f32 1.442695, %v430_v44  ;;  %v446_v51 = vmul.f32 1.442695, %v431_v47 }
 0x199   : > { %992 = vpow2.f32 %v434_v28 }
 0x19a   : > { %994 = vpow2.f32 %v436_v32 }
 0x19b   : > { %996 = vpow2.f32 %v438_v36 }
 0x19c   : > { %998 = vpow2.f32 %v440_v40 }
 0x19d   : > { %1000 = vpow2.f32 %v442_v45 }
 0x19e   : > { %1002 = vpow2.f32 %v444_v48 }
 0x19f   : > { %1004 = vpow2.f32 %v446_v51 }
 0x1a2   : > { %v991_v41 = vpop.eup %990 }
 0x1a3   : > { %v1422_v42 = vpop.eup %992  ;;  %457 = vperm.xlu1 %988, %v991_v41  }
 0x1a4   : > { %460 = vperm.xlu0 %989, %v1422_v42   ;;  %v1427_v46 = vpop.eup %994 }
 0x1a5   : > { %v1430_v50 = vpop.eup %996 }
 0x1a6   : > { %v1433_v52 = vpop.eup %998 }
 0x1a7   : > { %463 = vperm.xlu1 %988, %v1427_v46   ;;  %v1436_v53 = vpop.eup %1000 }
 0x1a8   : > { %v1439_v54 = vpop.eup %1002 }
 0x1a9   : > { %v1442_v55 = vpop.eup %1004 }
 0x1ab   : > { %466 = vperm.xlu1 %988, %v1430_v50  }
 0x1af   : > { %469 = vperm.xlu1 %988, %v1433_v52  }
 0x1b3   : > { %472 = vperm.xlu1 %988, %v1436_v53  }
 0x1b7   : > { %475 = vperm.xlu1 %988, %v1439_v54  }
 0x1bb   : > { %478 = vperm.xlu1 %988, %v1442_v55  }
 0x222   : > { %v458_v56 = vpop.permute.xlu1 %457 }
 0x223   : > { %v461_v60 = vpop.permute.xlu0 %460  ;;  %v483_v63 = vrot.slane %v458_v56, %v1384_v49 }
 0x224   : > { %v487_v62 = vrot.slane %v461_v60, %v1384_v49 }
 0x226   : > { %v464_v57 = vpop.permute.xlu1 %463  ;;  %v512_v7 = vsel %vm364_vm1, %v487_v62, %v483_v63 }
 0x227   : > { %v491_v1 = vrot.slane %v464_v57, %v1384_v49 }
 0x229   : > { %v513_v10 = vsel %vm366_vm2, %v491_v1, %v512_v7 }
 0x22a   : > { %v467_v58 = vpop.permute.xlu1 %466 }
 0x22b   : > { %v495_v2 = vrot.slane %v467_v58, %v1384_v49 }
 0x22d   : > { %v514_v12 = vsel %vm368_vm3, %v495_v2, %v513_v10 }
 0x22e   : > { %v470_v59 = vpop.permute.xlu1 %469 }
 0x22f   : > { %v499_v4 = vrot.slane %v470_v59, %v1384_v49 }
 0x231   : > { %v515_v13 = vsel %vm370_vm4, %v499_v4, %v514_v12 }
 0x232   : > { %v473_v61 = vpop.permute.xlu1 %472 }
 0x233   : > { %v503_v8 = vrot.slane %v473_v61, %v1384_v49 }
 0x235   : > { %v516_v19 = vsel %vm372_vm5, %v503_v8, %v515_v13 }
 0x236   : > { %v476_v6 = vpop.permute.xlu1 %475 }
 0x237   : > { %v507_v11 = vrot.slane %v476_v6, %v1384_v49 }
 0x239   : > { %v517_v21 = vsel %vm374_vm6, %v507_v11, %v516_v19 }
 0x23a   : > { %v479_v18 = vpop.permute.xlu1 %478 }
 0x23b   : > { %v511_v20 = vrot.slane %v479_v18, %v1384_v49 }
 0x23d   : > { %v518_v23 = vsel %vm376_vm7, %v511_v20, %v517_v21 }
 0x23e   : > { %v520_v24 = vsel %vm379_vm8, %v518_v23, 0.0 }
 0x23f   : > { %521 = vadd.xlane.f32.xlu1 %v520_v24 }
 0x2cc   : > { %v522_v25 = vpop.xlane.xlu1 %521 }
 0x2cd   : > { %v527_v26 = vrot.slane %v522_v25, %v1349_v9  ;;  %v531_v27 = vrot.slane %v522_v25, %v390_v15  ;;  %v535_v28 = vrot.slane %v522_v25, %v394_v16  ;;  %v539_v49 = vrot.slane %v522_v25, %v398_v17 }
 0x2ce   : > { %v543_v31 = vrot.slane %v522_v25, %v402_v22  ;;  %v547_v9 = vrot.slane %v522_v25, %v406_v29  ;;  %v551_v16 = vrot.slane %v522_v25, %v410_v33  ;;  %v555_v22 = vrot.slane %v522_v25, %v414_v37 }
 0x2cf   : > { %1006 = vrcp.f32 %v527_v26 }
 0x2d0   : > { %1008 = vrcp.f32 %v531_v27 }
 0x2d1   : > { %1010 = vrcp.f32 %v535_v28 }
 0x2d2   : > { %1012 = vrcp.f32 %v539_v49 }
 0x2d3   : > { %1014 = vrcp.f32 %v543_v31 }
 0x2d4   : > { %1016 = vrcp.f32 %v547_v9 }
 0x2d5   : > { %1018 = vrcp.f32 %v551_v16 }
 0x2d6   : > { %1020 = vrcp.f32 %v555_v22 }
 0x2d9   : > { %v1007_v30 = vpop.eup %1006 }
 0x2da   : > { %v565_v32 = vmul.f32 %v1007_v30, %v991_v41  ;;  %v1009_v34 = vpop.eup %1008 }
 0x2db   : > { %v567_v15 = vmul.f32 %v1009_v34, %v1422_v42  ;;  %v1011_v35 = vpop.eup %1010 }
 0x2dc   : > { %582 = vperm.xlu0 %989, %v565_v32   ;;  %v569_v17 = vmul.f32 %v1011_v35, %v1427_v46  ;;  %v1013_v36 = vpop.eup %1012 }
 0x2dd   : > { %v571_v38 = vmul.f32 %v1013_v36, %v1430_v50  ;;  %v1015_v39 = vpop.eup %1014 }
 0x2de   : > { %v573_v29 = vmul.f32 %v1015_v39, %v1433_v52  ;;  %v1017_v40 = vpop.eup %1016 }
 0x2df   : > { %v575_v41 = vmul.f32 %v1017_v40, %v1436_v53  ;;  %v1019_v33 = vpop.eup %1018 }
 0x2e0   : > { %587 = vperm.xlu0 %989, %v567_v15   ;;  %v577_v42 = vmul.f32 %v1019_v33, %v1439_v54  ;;  %v1021_v43 = vpop.eup %1020 }
 0x2e1   : > { %v579_v44 = vmul.f32 %v1021_v43, %v1442_v55 }
 0x2e4   : > { %592 = vperm.xlu0 %989, %v569_v17  }
 0x2e8   : > { %597 = vperm.xlu0 %989, %v571_v38  }
 0x2ec   : > { %602 = vperm.xlu0 %989, %v573_v29  }
 0x2f0   : > { %607 = vperm.xlu0 %989, %v575_v41  }
 0x2f4   : > { %612 = vperm.xlu0 %989, %v577_v42   ;;  %v1158_v42 = vmov 1983009808  }
 0x2f5   : > { %v702_v43 = vunpack.c.l.s4 %v1158_v42 }
 0x2f8   : > { %617 = vperm.xlu0 %989, %v579_v44  }
 0x35b   : > { %v583_v37 = vpop.permute.xlu0 %582 }
 0x35c   : > { %v620_v48 = vmul.f32 %v583_v37, %v1353_v14 }
 0x35e   : > { %v628_v54 = vsel %vm297_vm0, %v620_v48, 0.0  ;;  %v1159_v48 = vmov 1934713408  }
 0x35f   : > { %v588_v45 = vpop.permute.xlu0 %587  ;;  %v629_v59 = vrot.slane %v628_v54, 4 }
 0x360   : > { %v621_v46 = vmul.f32 %v588_v45, %v1353_v14 }
 0x361   : > { %v630_v4 = vadd.f32 %v629_v59, %v628_v54 }
 0x362   : > { %v635_v51 = vsel %vm297_vm0, %v621_v46, 0.0 }
 0x363   : > { %v593_v47 = vpop.permute.xlu0 %592  ;;  %v636_v55 = vrot.slane %v635_v51, 4  ;;  %v631_v19 = vrot.slane %v630_v4, 2 }
 0x364   : > { %v622_v50 = vmul.f32 %v593_v47, %v1353_v14 }
 0x365   : > { %v637_v63 = vadd.f32 %v636_v55, %v635_v51  ;;  %v632_v30 = vadd.f32 %v631_v19, %v630_v4 }
 0x366   : > { %v642_v52 = vsel %vm297_vm0, %v622_v50, 0.0 }
 0x367   : > { %v598_v53 = vpop.permute.xlu0 %597  ;;  %v643_v57 = vrot.slane %v642_v52, 4  ;;  %v638_v11 = vrot.slane %v637_v63, 2  ;;  %v633_v39 = vrot.slane %v632_v30, 1 }
 0x368   : > { %v623_v56 = vmul.f32 %v598_v53, %v1353_v14 }
 0x369   : > { %v644_v1 = vadd.f32 %v643_v57, %v642_v52  ;;  %v639_v26 = vadd.f32 %v638_v11, %v637_v63  ;;  %v634_v50 = vadd.f32 %v633_v39, %v632_v30 }
 0x36a   : > { %v649_v58 = vsel %vm297_vm0, %v623_v56, 0.0  ;;  %v703_v56 = vunpack.c.0.s8 %v702_v43 }
 0x36b   : > { %v650_v60 = vrot.slane %v649_v58, 4  ;;  %v603_v61 = vpop.permute.xlu0 %602  ;;  %v645_v13 = vrot.slane %v644_v1, 2  ;;  %v640_v16 = vrot.slane %v639_v26, 1 }
 0x36c   : > { %v624_v62 = vmul.f32 %v603_v61, %v1353_v14 }
 0x36d   : > { %v651_v6 = vadd.f32 %v650_v60, %v649_v58  ;;  %v646_v28 = vadd.f32 %v645_v13, %v644_v1  ;;  %v641_v44 = vadd.f32 %v640_v16, %v639_v26 }
 0x36e   : > { %v656_v2 = vsel %vm297_vm0, %v624_v62, 0.0 }
 0x36f   : > { %v657_v7 = vrot.slane %v656_v2, 4  ;;  %v608_v8 = vpop.permute.xlu0 %607  ;;  %v652_v20 = vrot.slane %v651_v6, 2  ;;  %v647_v22 = vrot.slane %v646_v28, 1  ;;  %v692_v55 = vsel %vm364_vm1, %v641_v44, %v634_v50 }
 0x370   : > { %v625_v10 = vmul.f32 %v608_v8, %v1353_v14 }
 0x371   : > { %v658_v12 = vadd.f32 %v657_v7, %v656_v2  ;;  %v653_v31 = vadd.f32 %v652_v20, %v651_v6  ;;  %v648_v47 = vadd.f32 %v647_v22, %v646_v28  ;;  %v706_v2 = vsub.s32 %v703_v56, %v1342_v3 }
 0x372   : > { %v663_v18 = vsel %vm297_vm0, %v625_v10, 0.0 }
 0x373   : > { %v664_v21 = vrot.slane %v663_v18, 4  ;;  %v613_v23 = vpop.permute.xlu0 %612  ;;  %v659_v24 = vrot.slane %v658_v12, 2  ;;  %v654_v29 = vrot.slane %v653_v31, 1  ;;  %v693_v59 = vsel %vm366_vm2, %v648_v47, %v692_v55 }
 0x374   : > { %v626_v25 = vmul.f32 %v613_v23, %v1353_v14 }
 0x375   : > { %v665_v27 = vadd.f32 %v664_v21, %v663_v18  ;;  %v660_v15 = vadd.f32 %v659_v24, %v658_v12  ;;  %v655_v51 = vadd.f32 %v654_v29, %v653_v31  ;;  %v1160_v12 = vmov 0.0  }
 0x376   : > { %v670_v49 = vsel %vm297_vm0, %v626_v25, 0.0 }
 0x377   : > { %v666_v32 = vrot.slane %v665_v27, 2  ;;  %v671_v34 = vrot.slane %v670_v49, 4  ;;  %v618_v9 = vpop.permute.xlu0 %617  ;;  %v661_v33 = vrot.slane %v660_v15, 1  ;;  %v694_v62 = vsel %vm368_vm3, %v655_v51, %v693_v59 }
 0x378   : > { %v627_v35 = vmul.f32 %v618_v9, %v1353_v14  ;;  %v717_v14 = vunpack.c.l.s4 %v1159_v48 }
 0x379   : > { %v667_v17 = vadd.f32 %v666_v32, %v665_v27  ;;  %v672_v36 = vadd.f32 %v671_v34, %v670_v49  ;;  %v662_v54 = vadd.f32 %v661_v33, %v660_v15 }
 0x37a   : > { %v677_v38 = vsel %vm297_vm0, %v627_v35, 0.0  ;;  %v718_v61 = vunpack.c.0.s8 %v717_v14 }
 0x37b   : > { %v673_v40 = vrot.slane %v672_v36, 2  ;;  %v678_v41 = vrot.slane %v677_v38, 4  ;;  %v668_v37 = vrot.slane %v667_v17, 1  ;;  %v695_v1 = vsel %vm370_vm4, %v662_v54, %v694_v62 }
 0x37c   : > { %v721_v8 = vsub.s32 %v718_v61, %v1342_v3 }
 0x37d   : > { %v674_v45 = vadd.f32 %v673_v40, %v672_v36  ;;  %v679_v46 = vadd.f32 %v678_v41, %v677_v38  ;;  %v669_v57 = vadd.f32 %v668_v37, %v667_v17 }
 0x37f   : > { %v675_v52 = vrot.slane %v674_v45, 1  ;;  %v680_v53 = vrot.slane %v679_v46, 2  ;;  %v696_v4 = vsel %vm372_vm5, %v669_v57, %v695_v1 }
 0x381   : > { %v681_v58 = vadd.f32 %v680_v53, %v679_v46  ;;  %v676_v60 = vadd.f32 %v675_v52, %v674_v45 }
 0x383   : > { %v682_v63 = vrot.slane %v681_v58, 1  ;;  %v697_v7 = vsel %vm374_vm6, %v676_v60, %v696_v4 }
 0x385   : > { %v683_v6 = vadd.f32 %v682_v63, %v681_v58 }
 0x387   : > { %v698_v10 = vsel %vm376_vm7, %v683_v6, %v697_v7 }
 0x388   : > { %v707_v11 = vrot.slane %v698_v10, %v706_v2  ;;  %v700_v13 = vcombine.high %v698_v10, %v1160_v12 }
 0x38a   : > { %v722_v18 = vrot.slane %v707_v11, %v721_v8  ;;  %v715_v19 = vcombine.high %v707_v11, %v1160_v12  ;;  %v714_v20 = vrot.slane %v700_v13, %v706_v2 }
 0x38c   : > { %v745_v21 = vcombine.high %v722_v18, %v1160_v12  ;;  %v729_v23 = vrot.slane %v715_v19, %v721_v8  ;;  %v737_v24 = vrot.slane %v714_v20, %v721_v8  ;;  %v730_v25 = vcombine.high %v714_v20, %v1160_v12 }
 0x38e   : > { %750 = vrot.lane.b32.xlu1 %v745_v21, %s1161_s20  ;;  %754 = vrot.lane.b32.xlu0 %v729_v23, %s1162_s29  ;;  %v744_v26 = vrot.slane %v730_v25, %v721_v8  ;;  %v747_v27 = vcombine.high %v737_v24, %v1160_v12  ;;  %v746_v28 = vcombine.high %v729_v23, %v1160_v12 }
 0x390   : > { %v748_v3 = vcombine.high %v744_v26, %v1160_v12 }
 0x392   : > { %762 = vrot.lane.b32.xlu0 %v747_v27, %s1161_s20  ;;  %770 = vrot.lane.b32.xlu1 %v748_v3, %s1163_s14 }
 0x396   : > { %766 = vrot.lane.b32.xlu0 %v744_v26, %s1162_s29 }
 0x39a   : > { %758 = vrot.lane.b32.xlu0 %v746_v28, %s1163_s14 }
 0x400   : > { %v755_v49 = vpop.permute.xlu0 %754  ;;  %v751_v31 = vpop.permute.xlu1 %750 }
 0x401   : > { %v773_v34 = vsel %vm297_vm0, %v722_v18, %v751_v31 }
 0x402   : > { %v775_v35 = vsel %vm774_vm9, %v773_v34, %v755_v49 }
 0x404   : > { %v763_v30 = vpop.permute.xlu0 %762  ;;  %v771_v16 = vpop.permute.xlu1 %770 }
 0x405   : > { %v778_v9 = vsel %vm297_vm0, %v737_v24, %v763_v30 }
 0x408   : > { %v767_v32 = vpop.permute.xlu0 %766 }
 0x409   : > { %v779_v15 = vsel %vm774_vm9, %v778_v9, %v767_v32 }
 0x40a   : > { %v780_v22 = vsel %vm776_vm10, %v779_v15, %v771_v16 }
 0x40c   : > { %v759_v17 = vpop.permute.xlu0 %758 }
 0x40d   : > { %v777_v36 = vsel %vm776_vm10, %v775_v35, %v759_v17 }
 0x40e   : > { %v783_v38 = vcombine.low %v777_v36, %v780_v22 }
 0x410   : > { %v790_v39 = vrot.slane %v783_v38, %v1345_v5 }
 0x412   : > { %v797_v29 = vrot.slane %v790_v39, %v1345_v5 }
 0x414   : > { %803 = vst.msk [vmem:[%s195_s16] sm:$0x3] %vm801_vm11, %v797_v29 }
 0x415   : > { %1095 = shalt.err (!%p1092_p1)
}
 0x416   : > { %s1096_s5 = scalar_lea.hbm %s1518_s23, 32  ;;  %s1100_s3 = scalar_lea.hbm %s1564_s2, 64 }
 0x417   : > { %p1097_p11 = scmp.ne.s32.totalorder %s1518_s23, %s1096_s5  ;;  %p1101_p4 = scmp.lt.u32.totalorder %s1518_s23, %s1564_s2 }
 0x418   : > { %p1102_p10 = scmp.lt.u32.totalorder %s1100_s3, %s1096_s5  ;;  %p1104_p6 = scmp.lt.u32.totalorder %s1096_s5, %s1518_s23 }
 0x419   : > { %p1098_p12 = pnand %p1097_p11, %p1577_p13 }
 0x41a   : > { %p1103_p3 = por %p1102_p10, %p1101_p4 }
 0x41b   : > { %p1099_p2 = pneg %p1098_p12 }
 0x41c   : > { %p1105_p7 = por %p1104_p6, %p1103_p3 }
 0x41e   : > { %p1106_p5 = pnand %p1105_p7, %p1099_p2 }
 0x420   : > { %1109 = shalt.err (!%p1106_p5)
}
 0x421   : > { %933 = dma.vmem_to_hbm [thread:$0]  (%p1577_p13), %s1520_s24, 32, %s1518_s23, %s805_s13  }
 0x422 PF: > { %s831_s29 = sand.u32 1, %s1140_s9   ;;  %p1578_p8 = scmp.ne.s32.totalorder %s1570_s22, 0 }
 0x423   : > { %p1579_p9 = scmp.ge.s32.totalorder %s1152_s12, 2  ;;  %s832_s14 = scalar_lea.sflag [#allocation4], %s831_s29 }
 0x425   : > { %p943_p0 = pnand %p1579_p9, %p1578_p8 }
 0x427   : > { %1135 = dma.done.wait (!%p943_p0), %s832_s14, 32  }
 0x428   : > { %1137 = vsyncadd (!%p943_p0), %s832_s14, 4294967264  ;;  %p18_p1 = scmp.ge.s32.totalorder %s1205_s15, 4   ;;  %s1580_s9 = smov %s1144_s10 }
 0x429   : > { %s1581_s10 = smov %s1148_s11  ;;  %s1582_s11 = smov %s1217_s18 }
 0x42a   : > { %s1583_s12 = smov %s1205_s15  ;;  %20 = sbr.rel (!%p18_p1) target bundleno = 7 (0x7), region = 86 }
 0x431   :  { %837 = vsyncpa [#allocation3], 1 }
 0x432   :  { %839 = vsyncpa [#allocation3 + $0x1], 1 }
 0x433   :  { %840 = vsyncpa [#allocation6], 1 }
 0x434   :  { %842 = vsyncpa [#allocation6 + $0x1], 1 }
 0x435   :  { %843 = vsyncpa [#allocation4], 1 }
 0x436   :  { %845 = vsyncpa [#allocation4 + $0x1], 1 }

</bundles_post_ra>
